<compile_context>
chip_gen: v7x
topology: tpu7x:2x2x1
jax: 0.10.0
libtpu: 0.0.40
codegen_flags: <defaults>
</compile_context>

<pallas_src>
import jax
import jax.numpy as jnp
from jax.experimental import pallas as pl
from jax.experimental.pallas import tpu as pltpu


def _swish_kernel(x_ref, o_ref):
    # Compute in f32 (v5e VPU/EUP have no bf16 math); HBM traffic stays in the
    # input dtype so the upcast is free for this memory-bound kernel.
    xf = x_ref[...].astype(jnp.float32)
    # sigmoid(x) = 0.5 * tanh(0.5 x) + 0.5: a single EUP transcendental plus a
    # few VALU ops (vs. exp + Newton-refined reciprocal), full f32 precision,
    # numerically stable for large |x|.  Edge case: x == -inf still gives NaN
    # (-inf * 0), same as the exp formulation / PyTorch reference behaviour.
    sig = 0.5 * jnp.tanh(0.5 * xf) + 0.5
    o_ref[...] = (xf * sig).astype(o_ref.dtype)


def _round_down(v, m):
    return (v // m) * m


def _swish_slab(flat, *, target_block_bytes, max_lanes, donate):
    """Run the kernel on a flat, 128-aligned-length array; return flat output."""
    n = flat.size
    dtype = flat.dtype
    itemsize = jnp.dtype(dtype).itemsize

    # Widest multiple of 128 (<= max_lanes) dividing n -> free reshape to a
    # lane-dense 2D slab (long unmasked vst runs, few DMA row descriptors).
    W = 128
    upper = min(max_lanes, _round_down(n, 128))
    for cand in range(upper, 127, -128):
        if n % cand == 0:
            W = cand
            break

    rows = n // W
    slab = flat.reshape(rows, W)

    # ~target_block_bytes per block (in the input dtype), rows rounded to the
    # sublane multiple (8); small inputs take the whole slab in one block.
    target_rows = max(8, _round_down(target_block_bytes // (itemsize * W), 8))
    block_rows = rows if rows <= target_rows else target_rows
    grid = (pl.cdiv(rows, block_rows),)

    # Size the VMEM limit from the actual footprint: 2 buffers x (in + out) x
    # block + margin, clamped so we never request the whole 64 MiB of a v7x TC
    # and never go below a safe 32 MiB floor.
    block_bytes = block_rows * W * itemsize
    vmem_limit = int(max(32 << 20, min(48 << 20, 4 * block_bytes + (4 << 20))))

    return pl.pallas_call(
        _swish_kernel,
        out_shape=jax.ShapeDtypeStruct(slab.shape, dtype),
        grid_spec=pltpu.PrefetchScalarGridSpec(
            num_scalar_prefetch=0,
            grid=grid,
            in_specs=[pl.BlockSpec((block_rows, W), lambda i: (i, 0))],
            out_specs=pl.BlockSpec((block_rows, W), lambda i: (i, 0)),
        ),
        compiler_params=pltpu.CompilerParams(
            # "parallel" lets the runtime shard the 1-D grid across TensorCores
            # on multi-core parts; it is a no-op (not an error) on 1-TC chips.
            dimension_semantics=("parallel",),
            vmem_limit_bytes=vmem_limit,
        ),
        cost_estimate=pl.CostEstimate(
            flops=4 * n, transcendentals=n, bytes_accessed=2 * n * itemsize),
        input_output_aliases=({0: 0} if donate else {}),
    )(slab).reshape(-1)


def swish(x, *, target_block_bytes=8 << 20, max_lanes=4096, donate=False):
    """Elementwise Swish (x * sigmoid(x)) for any shape / dtype.

    Set donate=True when the caller no longer needs x: the output aliases the
    input HBM buffer (same bytes moved, one fewer full-size allocation).
    """
    orig_shape = x.shape
    dtype = x.dtype
    n = x.size

    flat = x.reshape(-1)
    n_main = _round_down(n, 128)

    if n_main == 0:
        # Tiny input (< 128 elements): not worth a kernel launch.
        xf = flat.astype(jnp.float32)
        return (xf * jax.nn.sigmoid(xf)).astype(dtype).reshape(orig_shape)

    if n_main == n:
        out_flat = _swish_slab(flat, target_block_bytes=target_block_bytes,
                               max_lanes=max_lanes, donate=donate)
    else:
        # Rare ragged path (n % 128 != 0): 128-aligned prefix through the
        # kernel, the < 128 element tail in plain XLA — no pad-then-slice, so
        # HBM traffic stays ~1 read + 1 write of n elements.
        out_main = _swish_slab(flat[:n_main],
                               target_block_bytes=target_block_bytes,
                               max_lanes=max_lanes, donate=False)
        tail = flat[n_main:].astype(jnp.float32)
        tail_out = (tail * jax.nn.sigmoid(tail)).astype(dtype)
        out_flat = jnp.concatenate([out_main, tail_out])

    return out_flat.reshape(orig_shape)


if __name__ == "__main__":
    key = jax.random.PRNGKey(0)
    # NCHW input, small shape consistent with a conv-net activation
    x = jax.random.normal(key, (2, 4, 16, 16), dtype=jnp.float32)

    y = jax.block_until_ready(swish(x))

    # correctness check against pure-JAX reference
    ref = x * jax.nn.sigmoid(x)
    assert y.shape == x.shape and y.dtype == x.dtype
    assert jnp.max(jnp.abs(y - ref)) < 1e-5

    print("KERNEL_OK")
</pallas_src>

<mosaic_0001>
module attributes {stable_mosaic.version = 11 : i64} {
  func.func @_swish_kernel(%arg0: i32, %arg1: memref<1x2048xf32, #tpu.memory_space<vmem>>, %arg2: memref<1x2048xf32, #tpu.memory_space<vmem>>) attributes {dimension_semantics = [#tpu.dimension_semantics<parallel>], iteration_bounds = array<i64: 1>, scalar_prefetch = 0 : i64, scratch_operands = 0 : i64, tpu.core_type = #tpu.core_type<tc>, window_params = [{transform_indices = @transform_0, window_bounds = array<i64: 1, 2048>}, {transform_indices = @transform_1, window_bounds = array<i64: 1, 2048>}]} {
    %c0 = arith.constant 0 : index
    %c0_0 = arith.constant 0 : index
    %0 = vector.load %arg1[%c0, %c0_0] : memref<1x2048xf32, #tpu.memory_space<vmem>>, vector<1x2048xf32>
    %cst = arith.constant 5.000000e-01 : f32
    %1 = vector.broadcast %cst : f32 to vector<1x2048xf32>
    %2 = arith.mulf %1, %0 : vector<1x2048xf32>
    %3 = math.tanh %2 : vector<1x2048xf32>
    %cst_1 = arith.constant 5.000000e-01 : f32
    %4 = vector.broadcast %cst_1 : f32 to vector<1x2048xf32>
    %5 = arith.mulf %4, %3 : vector<1x2048xf32>
    %cst_2 = arith.constant 5.000000e-01 : f32
    %6 = vector.broadcast %cst_2 : f32 to vector<1x2048xf32>
    %7 = arith.addf %5, %6 : vector<1x2048xf32>
    %8 = arith.mulf %0, %7 : vector<1x2048xf32>
    %c0_3 = arith.constant 0 : index
    %c0_4 = arith.constant 0 : index
    %9 = vector.load %arg2[%c0_3, %c0_4] : memref<1x2048xf32, #tpu.memory_space<vmem>>, vector<1x2048xf32>
    tpu.vector_store %arg2[%c0_3, %c0_4], %8 {strides = array<i32>} : memref<1x2048xf32, #tpu.memory_space<vmem>>, vector<1x2048xf32>,
    return
  }
  func.func @transform_0(%arg0: i32) -> (i32, i32) {
    %c0_i32 = arith.constant 0 : i32
    %c0_i32_0 = arith.constant 0 : i32
    return %arg0, %c0_i32 : i32, i32
  }
  func.func @transform_1(%arg0: i32) -> (i32, i32) {
    %c0_i32 = arith.constant 0 : i32
    %c0_i32_0 = arith.constant 0 : i32
    return %arg0, %c0_i32 : i32, i32
  }
}

</mosaic_0001>

<bundles_post_ra>
// kernel: tpu_custom_call.1
= control target key start
LH: loop header
LB: loop body
LE: loop exit
PB: predicated region body
PF: predicated region fallthrough
CT: control target
= control target key end

     0   :  { %6 = vsyncpa [#allocation3], 0  ;;  %s140_s0 = inlined_call_operand.hbm [shape: f32[1,2048], index: 0, kind: input, shape index: {}]   ;;  %s141_s1 = inlined_call_operand.hbm [shape: f32[1,2048], index: 1, kind: output, shape index: {}]  }
   0x1   :  { %7 = vsyncpa [#allocation4], 0  ;;  %s104_s6 = smov [#allocation2]   ;;  %s56_s10 = scalar_lea.hbm %s140_s0, 256 }
   0x2   :  { %s14_s7 = sshll.u32 %s104_s6, 4  ;;  %p57_p0 = scmp.ne.s32.totalorder %s140_s0, %s56_s10  ;;  %s15_s7 = int_to_ptr.vmem [resolvable:$true] %s14_s7 }
   0x3   :  { %p60_p1 = scmp.lt.u32.totalorder %s56_s10, %s140_s0 }
   0x5   :  { %p62_p2 = pnand %p60_p1, %p57_p0 }
   0x7   :  { %65 = shalt.err (!%p62_p2)
}
   0x8   :  { %s66_s15 = scalar_lea.vmem %s15_s7, 256  ;;  %p71_p4 = scmp.lt.s32.totalorder %s15_s7, %s15_s7 }
   0x9   :  { %p67_p3 = scmp.ne.s32.totalorder %s15_s7, %s66_s15  ;;  %p72_p5 = scmp.lt.s32.totalorder %s66_s15, %s66_s15 }
   0xb   :  { %p73_p6 = por %p72_p5, %p71_p4 }
   0xd   :  { %p74_p7 = pnand %p73_p6, %p67_p3 }
   0xf   :  { %77 = shalt.err (!%p74_p7)
}
  0x10   :  { %17 = dma.hbm_to_vmem [thread:$0]  %s140_s0, 256, %s15_s7, [#allocation3]  }
  0x11   :  { %100 = dma.done.wait [#allocation3], 256  }
  0x12   :  { %101 = vsyncadd [#allocation3], 4294967040  ;;  %v21_v0 = vld [vmem:[#allocation2] sm:$0xff]  ;;  %v22_v1 = vld [vmem:[#allocation2 + $0x8] sm:$0xff]  ;;  %s105_s18 = smov [#allocation5]  }
  0x13   :  { %v23_v2 = vmul.f32 0.5, %v21_v0  ;;  %v24_v3 = vmul.f32 0.5, %v22_v1  ;;  %s41_s19 = sshll.u32 %s105_s18, 4  ;;  %s42_s19 = int_to_ptr.vmem [resolvable:$true] %s41_s19 }
  0x14   :  { %s78_s0 = scalar_lea.vmem %s42_s19, 256  ;;  %p83_p9 = scmp.lt.s32.totalorder %s42_s19, %s42_s19 }
  0x15   :  { %52 = vtanh.f32 %v23_v2  ;;  %p79_p8 = scmp.ne.s32.totalorder %s42_s19, %s78_s0  ;;  %p84_p10 = scmp.lt.s32.totalorder %s78_s0, %s78_s0 }
  0x16   :  { %54 = vtanh.f32 %v24_v3 }
  0x17   :  { %p85_p11 = por %p84_p10, %p83_p9 }
  0x19   :  { %p86_p12 = pnand %p85_p11, %p79_p8 }
  0x1f   :  { %v53_v4 = vpop.eup %52 }
  0x20   :  { %v55_v5 = vpop.eup %54  ;;  %v27_v6 = vmul.f32 0.5, %v53_v4 }
  0x21   :  { %v28_v7 = vmul.f32 0.5, %v55_v5 }
  0x22   :  { %v29_v8 = vadd.f32 0.5, %v27_v6 }
  0x23   :  { %v30_v9 = vadd.f32 0.5, %v28_v7 }
  0x24   :  { %v31_v10 = vmul.f32 %v29_v8, %v21_v0 }
  0x25   :  { %v32_v11 = vmul.f32 %v30_v9, %v22_v1 }
  0x26   :  { %33 = vst [vmem:[#allocation5] sm:$0xff] %v31_v10 }
  0x27   :  { %34 = vst [vmem:[#allocation5 + $0x8] sm:$0xff] %v32_v11 }
  0x28   :  { %89 = shalt.err (!%p86_p12)
}
  0x29   :  { %s90_s22 = scalar_lea.hbm %s141_s1, 256 }
  0x2a   :  { %p91_p13 = scmp.ne.s32.totalorder %s141_s1, %s90_s22  ;;  %p94_p0 = scmp.lt.u32.totalorder %s90_s22, %s141_s1 }
  0x2c   :  { %p96_p1 = pnand %p94_p0, %p91_p13 }
  0x2e   :  { %99 = shalt.err (!%p96_p1)
}
  0x2f   :  { %44 = dma.vmem_to_hbm [thread:$0]  %s42_s19, 256, %s141_s1, [#allocation4]  }
  0x30   :  { %102 = dma.done.wait [#allocation4], 256  }
  0x31   :  { %103 = vsyncadd [#allocation4], 4294967040 }
  0x32   :  { %48 = vsyncpa [#allocation3], 1 }
  0x33   :  { %49 = vsyncpa [#allocation4], 1 }

</bundles_post_ra>
